<compile_context>
chip_gen: v7x
topology: tpu7x:2x2x1
jax: 0.10.0
libtpu: 0.0.40
codegen_flags: <defaults>
</compile_context>

<pallas_src>
import functools
import math

import jax
import jax.numpy as jnp
from jax.experimental import pallas as pl
from jax.experimental.pallas import tpu as pltpu


def _round_up(x, m):
    return (x + m - 1) // m * m


_MAX_TILE_ROWS = 1024


def _vmem_capacity_bytes():
    """Per-core VMEM capacity; generation-aware with a conservative fallback."""
    try:
        cap = int(pltpu.get_tpu_info().vmem_capacity_bytes)
        if cap > 0:
            return cap
    except Exception:
        pass
    return 64 << 20  # v7x per-TC capacity: safe lower bound on every generation.


def _vmem_budget():
    # ~3/4 of physical VMEM: ~96 MiB on v5e/v6e (128 MiB), ~48 MiB on v7x (64 MiB).
    return (_vmem_capacity_bytes() * 3) // 4


def _vmem_limit(need_bytes):
    cap = _vmem_capacity_bytes()
    hi = int(cap * 0.92)
    return int(min(hi, max(32 << 20, int(1.3 * need_bytes) + (2 << 20))))


def _mxu_round(t):
    """MXU/bandwidth-friendly row-tile rounding: 256 -> 128 -> 16 -> 8."""
    if t >= 512:
        return (t // 256) * 256
    if t >= 128:
        return (t // 128) * 128
    if t >= 16:
        return (t // 16) * 16
    return 8


def _pick_tile_rows(rows, per_row_bytes, fixed_bytes, budget):
    """Largest MXU-aligned row tile whose pipelined blocks fit the budget."""
    avail = max(budget - fixed_bytes, 1 << 20)
    t = avail // max(per_row_bytes, 1)
    t = max(8, min(_MAX_TILE_ROWS, _mxu_round(t)))
    # Never tile wider than the (8-aligned) problem itself.
    return min(t, max(8, _round_up(rows, 8)))


def _single_buffered_spec(block_shape, index_map):
    """BlockSpec for a grid-constant operand: single VMEM buffer (no double-buffering)."""
    try:
        return pl.BlockSpec(block_shape, index_map, pipeline_mode=pl.Buffered(1))
    except Exception:  # pragma: no cover - older jax without pipeline_mode kwarg
        return pl.BlockSpec(block_shape, index_map)


# ----------------------------------------------------------------------------
# Fused PreNorm + Linear kernel (single HBM round trip, no intermediate).
# ----------------------------------------------------------------------------
def _fused_prenorm_linear_kernel(x_ref, w_ref, b_ref, o_ref, xhat_ref, *, eps):
    # LayerNorm once per row tile (first N tile); cached xhat reused afterwards.
    @pl.when(pl.program_id(1) == 0)
    def _():
        x = x_ref[...].astype(jnp.float32)                    # (tm, dim)
        mean = jnp.mean(x, axis=-1, keepdims=True)
        centered = x - mean
        var = jnp.mean(centered * centered, axis=-1, keepdims=True)
        xhat_ref[...] = (centered * jax.lax.rsqrt(var + eps)).astype(xhat_ref.dtype)

    # LayerNorm affine is already folded into w_ref / b_ref by the wrapper.
    acc = jnp.dot(xhat_ref[...], w_ref[...],
                  preferred_element_type=jnp.float32)         # (tm, tn)
    o_ref[...] = (acc + b_ref[...]).astype(o_ref.dtype)


def prenorm_linear(x, gamma, beta, w, b, *, eps=1e-5,
                   matmul_dtype=jnp.bfloat16, out_dtype=None):
    """Fused PreNorm with fn = Linear(w, b): Linear(LayerNorm(x))."""
    orig_shape = x.shape
    dim = orig_shape[-1]
    dim_out = w.shape[1]
    rows = math.prod(orig_shape[:-1])
    out_dtype = x.dtype if out_dtype is None else out_dtype
    x2 = x.reshape(rows, dim)

    # Fold the LayerNorm affine into the linear (one-time, plain JAX):
    #   (xhat*gamma + beta) @ w + b == xhat @ (gamma[:,None]*w) + (beta@w + b)
    w32 = w.astype(jnp.float32)
    w_eff = (gamma.astype(jnp.float32)[:, None] * w32).astype(matmul_dtype)
    b_eff = (beta.astype(jnp.float32) @ w32 + b.astype(jnp.float32)).reshape(1, dim_out)

    budget = _vmem_budget()
    x_bytes = x2.dtype.itemsize
    w_bytes = jnp.dtype(matmul_dtype).itemsize
    o_bytes = jnp.dtype(out_dtype).itemsize

    # --- N tiling: bound the resident weight block independent of dim_out. ---
    if dim_out % 128 == 0:
        max_tn = ((budget // 2) // (2 * dim * w_bytes)) // 128 * 128
        tn = int(min(dim_out, max(128, max_tn), 1024))
    else:
        tn = dim_out        # small / unaligned dim_out: single full-width N tile
    n_tiles = pl.cdiv(dim_out, tn)

    # Single-buffer the weight/bias when their block index is constant over the grid.
    wb_buffers = 1 if n_tiles == 1 else 2
    if n_tiles == 1:
        w_spec = _single_buffered_spec((dim, tn), lambda i, j: (0, j))
        b_spec = _single_buffered_spec((1, tn), lambda i, j: (0, j))
    else:
        w_spec = pl.BlockSpec((dim, tn), lambda i, j: (0, j))
        b_spec = pl.BlockSpec((1, tn), lambda i, j: (0, j))

    # --- row tiling against the remaining budget. ---
    per_row = (2 * dim * x_bytes          # x block, double-buffered
               + dim * w_bytes            # xhat scratch
               + 2 * tn * o_bytes)        # out block, double-buffered
    fixed = wb_buffers * (dim * tn * w_bytes + tn * 4)
    tile_rows = _pick_tile_rows(rows, per_row, fixed, budget)
    row_tiles = pl.cdiv(rows, tile_rows)
    need = tile_rows * per_row + fixed

    out = pl.pallas_call(
        functools.partial(_fused_prenorm_linear_kernel, eps=eps),
        out_shape=jax.ShapeDtypeStruct((rows, dim_out), out_dtype),
        grid_spec=pltpu.PrefetchScalarGridSpec(
            num_scalar_prefetch=0,
            grid=(row_tiles, n_tiles),
            in_specs=[
                pl.BlockSpec((tile_rows, dim), lambda i, j: (i, 0)),
                w_spec,
                b_spec,
            ],
            out_specs=pl.BlockSpec((tile_rows, tn), lambda i, j: (i, j)),
            scratch_shapes=[pltpu.VMEM((tile_rows, dim), matmul_dtype)],
        ),
        compiler_params=pltpu.CompilerParams(
            dimension_semantics=("parallel", "arbitrary"),
            vmem_limit_bytes=_vmem_limit(need),
        ),
    )(x2, w_eff, b_eff)

    return out.reshape(*orig_shape[:-1], dim_out)


# ----------------------------------------------------------------------------
# Standalone LayerNorm kernel (for the generic PreNorm path with arbitrary fn).
# ----------------------------------------------------------------------------
def _layernorm_kernel(x_ref, gamma_ref, beta_ref, o_ref, *, eps):
    x = x_ref[...].astype(jnp.float32)
    mean = jnp.mean(x, axis=-1, keepdims=True)
    centered = x - mean
    var = jnp.mean(centered * centered, axis=-1, keepdims=True)
    y = centered * jax.lax.rsqrt(var + eps)
    o_ref[...] = (y * gamma_ref[...] + beta_ref[...]).astype(o_ref.dtype)


def layernorm(x2, gamma, beta, *, eps=1e-5, out_dtype=None):
    """x2: (rows, dim); gamma/beta: (dim,).  out_dtype=jnp.bfloat16 halves the
    intermediate HBM traffic when the downstream fn accepts bf16."""
    rows, dim = x2.shape
    out_dtype = x2.dtype if out_dtype is None else out_dtype
    gamma2 = gamma.reshape(1, dim).astype(jnp.float32)
    beta2 = beta.reshape(1, dim).astype(jnp.float32)

    budget = _vmem_budget()
    per_row = 2 * dim * x2.dtype.itemsize + 2 * dim * jnp.dtype(out_dtype).itemsize
    fixed = 2 * dim * 4
    tile_rows = _pick_tile_rows(rows, per_row, fixed, budget)
    row_tiles = pl.cdiv(rows, tile_rows)
    need = tile_rows * per_row + fixed

    return pl.pallas_call(
        functools.partial(_layernorm_kernel, eps=eps),
        out_shape=jax.ShapeDtypeStruct((rows, dim), out_dtype),
        grid_spec=pltpu.PrefetchScalarGridSpec(
            num_scalar_prefetch=0,
            grid=(row_tiles,),
            in_specs=[
                pl.BlockSpec((tile_rows, dim), lambda i: (i, 0)),
                _single_buffered_spec((1, dim), lambda i: (0, 0)),
                _single_buffered_spec((1, dim), lambda i: (0, 0)),
            ],
            out_specs=pl.BlockSpec((tile_rows, dim), lambda i: (i, 0)),
        ),
        compiler_params=pltpu.CompilerParams(
            dimension_semantics=("parallel",),
            vmem_limit_bytes=_vmem_limit(need),
        ),
    )(x2, gamma2, beta2)


# ----------------------------------------------------------------------------
# Linear kernel (stand-in for the wrapped attention `fn` in the generic path).
# Prefer prenorm_linear() over prenorm() whenever fn is linear-like.
# ----------------------------------------------------------------------------
def _linear_kernel(x_ref, w_ref, b_ref, o_ref):
    acc = jnp.dot(x_ref[...].astype(w_ref.dtype), w_ref[...],
                  preferred_element_type=jnp.float32)
    o_ref[...] = (acc + b_ref[...]).astype(o_ref.dtype)


def linear(x2, w, b):
    """x2: (rows, dim_in); w: (dim_in, dim_out); b: (dim_out,)."""
    rows, dim_in = x2.shape
    dim_out = w.shape[1]
    b2 = b.reshape(1, dim_out).astype(jnp.float32)

    budget = _vmem_budget()
    x_bytes = x2.dtype.itemsize
    per_row = 2 * dim_in * x_bytes + 2 * dim_out * x_bytes
    fixed = dim_in * dim_out * w.dtype.itemsize + dim_out * 4   # single-buffered
    tile_rows = _pick_tile_rows(rows, per_row, fixed, budget)
    row_tiles = pl.cdiv(rows, tile_rows)
    need = tile_rows * per_row + fixed

    return pl.pallas_call(
        _linear_kernel,
        out_shape=jax.ShapeDtypeStruct((rows, dim_out), x2.dtype),
        grid_spec=pltpu.PrefetchScalarGridSpec(
            num_scalar_prefetch=0,
            grid=(row_tiles,),
            in_specs=[
                pl.BlockSpec((tile_rows, dim_in), lambda i: (i, 0)),
                _single_buffered_spec((dim_in, dim_out), lambda i: (0, 0)),
                _single_buffered_spec((1, dim_out), lambda i: (0, 0)),
            ],
            out_specs=pl.BlockSpec((tile_rows, dim_out), lambda i: (i, 0)),
        ),
        compiler_params=pltpu.CompilerParams(
            dimension_semantics=("parallel",),
            vmem_limit_bytes=_vmem_limit(need),
        ),
    )(x2, w, b2)


# ----------------------------------------------------------------------------
# Generic PreNorm wrapper:   out = fn(LayerNorm(x), **kwargs)
# ----------------------------------------------------------------------------
def prenorm(x, gamma, beta, fn, **kwargs):
    # TODO(synk): the wrapped attention `fn` is caller-supplied; only its
    # LayerNorm prologue is a Pallas kernel here (use prenorm_linear for the
    # fused linear-like case).
    *lead, dim = x.shape
    rows = math.prod(lead)
    normed = layernorm(x.reshape(rows, dim), gamma, beta)
    out = fn(normed, **kwargs)
    assert out.shape[0] == rows, "wrapped fn must preserve the row count"
    return out.reshape(*lead, -1)


def _reference(x, gamma, beta, w, b, eps=1e-5):
    mean = jnp.mean(x, axis=-1, keepdims=True)
    var = jnp.mean((x - mean) ** 2, axis=-1, keepdims=True)
    normed = (x - mean) / jnp.sqrt(var + eps) * gamma + beta
    return jnp.einsum("bsd,de->bse", normed, w) + b


if __name__ == "__main__":
    batch, seq, dim = 2, 8, 32
    key = jax.random.PRNGKey(0)
    kx, kw, kb = jax.random.split(key, 3)

    x = jax.random.normal(kx, (batch, seq, dim), dtype=jnp.float32)

    # LayerNorm params: PyTorch default init (weight=1, bias=0).
    gamma = jnp.ones((dim,), dtype=jnp.float32)
    beta = jnp.zeros((dim,), dtype=jnp.float32)

    # Deterministic params for the wrapped `fn` (Linear(dim, dim) stand-in for
    # the attention block passed to PreNorm).
    w = jax.random.normal(kw, (dim, dim), dtype=jnp.float32) * 0.02
    b = jax.random.normal(kb, (dim,), dtype=jnp.float32) * 0.02

    ref = _reference(x, gamma, beta, w, b)

    # 1) Fused PreNorm+Linear, f32 matmul (tight check).
    out_f32 = jax.block_until_ready(
        prenorm_linear(x, gamma, beta, w, b, matmul_dtype=jnp.float32))
    assert out_f32.shape == (batch, seq, dim)
    assert jnp.allclose(out_f32, ref, atol=1e-4, rtol=1e-4), (
        float(jnp.max(jnp.abs(out_f32 - ref))))

    # 2) Fused PreNorm+Linear, bf16 matmul inputs / f32 accumulation.
    out_bf16 = jax.block_until_ready(
        prenorm_linear(x, gamma, beta, w, b, matmul_dtype=jnp.bfloat16))
    assert out_bf16.shape == (batch, seq, dim)
    assert jnp.allclose(out_bf16, ref, atol=2e-2, rtol=2e-2), (
        float(jnp.max(jnp.abs(out_bf16 - ref))))

    # 3) Ragged row count (rows=10, not a tile multiple): exercises the
    #    pad-free cdiv grid with a masked edge block.
    xr = x[:, :5, :]
    ref_r = _reference(xr, gamma, beta, w, b)
    out_r = jax.block_until_ready(
        prenorm_linear(xr, gamma, beta, w, b, matmul_dtype=jnp.float32))
    assert out_r.shape == (batch, 5, dim)
    assert jnp.allclose(out_r, ref_r, atol=1e-4, rtol=1e-4), (
        float(jnp.max(jnp.abs(out_r - ref_r))))

    # 4) Generic PreNorm path (standalone LayerNorm kernel + arbitrary fn).
    fn = lambda t: linear(t, w, b)
    out_gen = jax.block_until_ready(prenorm(x, gamma, beta, fn))
    assert out_gen.shape == (batch, seq, dim)
    assert jnp.allclose(out_gen, ref, atol=1e-4, rtol=1e-4), (
        float(jnp.max(jnp.abs(out_gen - ref))))

    print("KERNEL_OK")
</pallas_src>

<mosaic_0001>
module attributes {stable_mosaic.version = 11 : i64} {
  func.func @_fused_prenorm_linear_kernel(%arg0: i32, %arg1: i32, %arg2: memref<16x32xf32, #tpu.memory_space<vmem>>, %arg3: memref<32x32xf32, #tpu.memory_space<vmem>>, %arg4: memref<1x32xf32, #tpu.memory_space<vmem>>, %arg5: memref<16x32xf32, #tpu.memory_space<vmem>>, %arg6: memref<16x32xf32, #tpu.memory_space<vmem>>) attributes {dimension_semantics = [#tpu.dimension_semantics<parallel>, #tpu.dimension_semantics<arbitrary>], iteration_bounds = array<i64: 1, 1>, scalar_prefetch = 0 : i64, scratch_operands = 1 : i64, tpu.core_type = #tpu.core_type<tc>, window_params = [{transform_indices = @transform_0, window_bounds = array<i64: 16, 32>}, {pipeline_mode = #tpu.pipeline_mode<synchronous>, transform_indices = @transform_1, window_bounds = array<i64: 32, 32>}, {pipeline_mode = #tpu.pipeline_mode<synchronous>, transform_indices = @transform_2, window_bounds = array<i64: 1, 32>}, {transform_indices = @transform_3, window_bounds = array<i64: 16, 32>}]} {
    %c0_i32 = arith.constant 0 : i32
    %0 = arith.cmpi eq, %arg1, %c0_i32 : i32
    %1 = arith.extui %0 : i1 to i32
    %c0_i32_0 = arith.constant 0 : i32
    %2 = arith.cmpi ne, %1, %c0_i32_0 : i32
    scf.if %2 {
      %c0_8 = arith.constant 0 : index
      %c0_9 = arith.constant 0 : index
      %10 = vector.load %arg2[%c0_8, %c0_9] : memref<16x32xf32, #tpu.memory_space<vmem>>, vector<16x32xf32>
      %cst_10 = arith.constant dense<0.000000e+00> : vector<16xf32>
      %11 = vector.multi_reduction <add>, %10, %cst_10 [1] : vector<16x32xf32> to vector<16xf32>
      %12 = vector.shape_cast %11 : vector<16xf32> to vector<16x1xf32>
      %cst_11 = arith.constant 3.200000e+01 : f32
      %13 = vector.broadcast %cst_11 : f32 to vector<16x1xf32>
      %14 = arith.divf %12, %13 : vector<16x1xf32>
      %15 = vector.broadcast %14 : vector<16x1xf32> to vector<16x32xf32>
      %16 = arith.subf %10, %15 : vector<16x32xf32>
      %17 = arith.mulf %16, %16 : vector<16x32xf32>
      %cst_12 = arith.constant dense<0.000000e+00> : vector<16xf32>
      %18 = vector.multi_reduction <add>, %17, %cst_12 [1] : vector<16x32xf32> to vector<16xf32>
      %19 = vector.shape_cast %18 : vector<16xf32> to vector<16x1xf32>
      %cst_13 = arith.constant 3.200000e+01 : f32
      %20 = vector.broadcast %cst_13 : f32 to vector<16x1xf32>
      %21 = arith.divf %19, %20 : vector<16x1xf32>
      %cst_14 = arith.constant 9.99999974E-6 : f32
      %22 = vector.broadcast %cst_14 : f32 to vector<16x1xf32>
      %23 = arith.addf %21, %22 : vector<16x1xf32>
      %24 = math.rsqrt %23 : vector<16x1xf32>
      %25 = vector.broadcast %24 : vector<16x1xf32> to vector<16x32xf32>
      %26 = arith.mulf %16, %25 : vector<16x32xf32>
      %c0_15 = arith.constant 0 : index
      %c0_16 = arith.constant 0 : index
      %27 = vector.load %arg6[%c0_15, %c0_16] : memref<16x32xf32, #tpu.memory_space<vmem>>, vector<16x32xf32>
      tpu.vector_store %arg6[%c0_15, %c0_16], %26 {strides = array<i32>} : memref<16x32xf32, #tpu.memory_space<vmem>>, vector<16x32xf32>,
    } else {
    }
    %c0 = arith.constant 0 : index
    %c0_1 = arith.constant 0 : index
    %3 = vector.load %arg6[%c0, %c0_1] : memref<16x32xf32, #tpu.memory_space<vmem>>, vector<16x32xf32>
    %c0_2 = arith.constant 0 : index
    %c0_3 = arith.constant 0 : index
    %4 = vector.load %arg3[%c0_2, %c0_3] : memref<32x32xf32, #tpu.memory_space<vmem>>, vector<32x32xf32>
    %cst = arith.constant dense<0.000000e+00> : vector<16x32xf32>
    %5 = tpu.matmul %3, %4, %cst {dimension_numbers = #tpu.dot_dimension_numbers<[1], [0], [0], [1], [0, 0, 1, 1], [], []>} : vector<16x32xf32>, vector<32x32xf32>, vector<16x32xf32> -> vector<16x32xf32>
    %c0_4 = arith.constant 0 : index
    %c0_5 = arith.constant 0 : index
    %6 = vector.load %arg4[%c0_4, %c0_5] : memref<1x32xf32, #tpu.memory_space<vmem>>, vector<1x32xf32>
    %7 = vector.broadcast %6 : vector<1x32xf32> to vector<16x32xf32>
    %8 = arith.addf %5, %7 : vector<16x32xf32>
    %c0_6 = arith.constant 0 : index
    %c0_7 = arith.constant 0 : index
    %9 = vector.load %arg5[%c0_6, %c0_7] : memref<16x32xf32, #tpu.memory_space<vmem>>, vector<16x32xf32>
    tpu.vector_store %arg5[%c0_6, %c0_7], %8 {strides = array<i32>} : memref<16x32xf32, #tpu.memory_space<vmem>>, vector<16x32xf32>,
    return
  }
  func.func @transform_0(%arg0: i32, %arg1: i32) -> (i32, i32) {
    %c0_i32 = arith.constant 0 : i32
    %c0_i32_0 = arith.constant 0 : i32
    return %arg0, %c0_i32 : i32, i32
  }
  func.func @transform_1(%arg0: i32, %arg1: i32) -> (i32, i32) {
    %c0_i32 = arith.constant 0 : i32
    %c0_i32_0 = arith.constant 0 : i32
    return %c0_i32, %arg1 : i32, i32
  }
  func.func @transform_2(%arg0: i32, %arg1: i32) -> (i32, i32) {
    %c0_i32 = arith.constant 0 : i32
    %c0_i32_0 = arith.constant 0 : i32
    return %c0_i32, %arg1 : i32, i32
  }
  func.func @transform_3(%arg0: i32, %arg1: i32) -> (i32, i32) {
    %c0_i32 = arith.constant 0 : i32
    return %arg0, %arg1 : i32, i32
  }
}

</mosaic_0001>

<bundles_post_ra>
// kernel: tpu_custom_call.1
= control target key start
LH: loop header
LB: loop body
LE: loop exit
PB: predicated region body
PF: predicated region fallthrough
CT: control target
= control target key end

     0   :  { %8 = vsyncpa [#allocation4], 0  ;;  %s386_s0 = inlined_call_operand.hbm [shape: f32[16,32], index: 0, kind: input, shape index: {}]   ;;  %s387_s1 = inlined_call_operand.hbm [shape: f32[32,32], index: 1, kind: input, shape index: {}]   ;;  %s388_s2 = inlined_call_operand.vmem [shape: f32[1,32], index: 2, kind: input, shape index: {}]   ;;  %s389_s3 = inlined_call_operand.hbm [shape: f32[16,32], index: 3, kind: output, shape index: {}]  }
   0x1   :  { %9 = vsyncpa [#allocation7], 0 }
   0x2   :  { %10 = vsyncpa [#allocation5], 0  ;;  %s303_s12 = smov [#allocation3]   ;;  %s231_s16 = scalar_lea.hbm %s386_s0, 256 }
   0x3   :  { %s16_s13 = sshll.u32 %s303_s12, 4  ;;  %p232_p0 = scmp.ne.s32.totalorder %s386_s0, %s231_s16  ;;  %s17_s13 = int_to_ptr.vmem [resolvable:$true] %s16_s13 }
   0x4   :  { %p235_p1 = scmp.lt.u32.totalorder %s231_s16, %s386_s0 }
   0x6   :  { %p237_p2 = pnand %p235_p1, %p232_p0 }
   0x8   :  { %240 = shalt.err (!%p237_p2)
}
   0x9   :  { %s241_s21 = scalar_lea.vmem %s17_s13, 256  ;;  %p246_p4 = scmp.lt.s32.totalorder %s17_s13, %s17_s13 }
   0xa   :  { %p242_p3 = scmp.ne.s32.totalorder %s17_s13, %s241_s21  ;;  %p247_p5 = scmp.lt.s32.totalorder %s241_s21, %s241_s21 }
   0xc   :  { %p248_p6 = por %p247_p5, %p246_p4 }
   0xe   :  { %p249_p7 = pnand %p248_p6, %p242_p3 }
  0x10   :  { %252 = shalt.err (!%p249_p7)
}
  0x11   :  { %s304_s22 = smov 128   ;;  %s305_s23 = smov 8  }
  0x12   :  { %22 = dma.hbm_to_vmem [thread:$0]  %s386_s0, 256, %s17_s13, [#allocation4], %s304_s22, %s304_s22, %s305_s23  }
  0x13   :  { %s306_s26 = smov [#allocation6]   ;;  %s253_s30 = scalar_lea.hbm %s387_s1, 512 }
  0x14   :  { %s28_s27 = sshll.u32 %s306_s26, 4  ;;  %p254_p8 = scmp.ne.s32.totalorder %s387_s1, %s253_s30  ;;  %s29_s27 = int_to_ptr.vmem [resolvable:$true] %s28_s27 }
  0x15   :  { %p257_p9 = scmp.lt.u32.totalorder %s253_s30, %s387_s1 }
  0x17   :  { %p259_p10 = pnand %p257_p9, %p254_p8 }
  0x19   :  { %262 = shalt.err (!%p259_p10)
}
  0x1a   :  { %s263_s8 = scalar_lea.vmem %s29_s27, 512  ;;  %p268_p12 = scmp.lt.s32.totalorder %s29_s27, %s29_s27 }
  0x1b   :  { %p264_p11 = scmp.ne.s32.totalorder %s29_s27, %s263_s8  ;;  %p269_p13 = scmp.lt.s32.totalorder %s263_s8, %s263_s8 }
  0x1d   :  { %p270_p0 = por %p269_p13, %p268_p12 }
  0x1f   :  { %p271_p1 = pnand %p270_p0, %p264_p11 }
  0x21   :  { %274 = shalt.err (!%p271_p1)
}
  0x22   :  { %34 = dma.hbm_to_vmem [thread:$0]  %s387_s1, 512, %s29_s27, [#allocation7], %s304_s22, %s304_s22, %s305_s23  }
  0x23   :  { %297 = dma.done.wait [#allocation4], 256  }
  0x24   :  { %298 = vsyncadd [#allocation4], 4294967040 }
  0x25   :  { %299 = dma.done.wait [#allocation7], 512  }
  0x26   :  { %300 = vsyncadd [#allocation7], 4294966784  ;;  %vm49_vm0 = vcmask 261120   ;;  %v47_v0 = vld [vmem:[#allocation3] sm:$0xff]  ;;  %v48_v1 = vld [vmem:[#allocation3 + $0x8] sm:$0xff]  ;;  %s307_s11 = smov [#allocation8]  }
  0x27   :  { %v50_v2 = vsel %vm49_vm0, %v47_v0, 0.0  ;;  %v53_v3 = vsel %vm49_vm0, %v48_v1, 0.0  ;;  %v81_v14 = vld [vmem:[#allocation6] sm:$0xff]  ;;  %v82_v15 = vld [vmem:[#allocation6 + $0x8] sm:$0xff]  ;;  %v83_v17 = vld [vmem:[#allocation6 + $0x10] sm:$0xff]  ;;  %s181_s12 = sshll.u32 %s307_s11, 4  ;;  %s182_s12 = int_to_ptr.vmem [resolvable:$true] %s181_s12 }
  0x28   :  { %51 = vadd.xlane.f32.xlu0 %v50_v2  ;;  %v214_v16 = vpack.c.bf16 %v82_v15, %v81_v14  ;;  %v84_v18 = vld [vmem:[#allocation6 + $0x18] sm:$0xff]  ;;  %v194_v32 = vld [vmem:[%s388_s2] ss:$0 sm:$0xff]  ;;  %s275_s13 = scalar_lea.vmem %s182_s12, 256  ;;  %p280_p3 = scmp.lt.s32.totalorder %s182_s12, %s182_s12 }
  0x29   :  { %v218_v19 = vpack.c.bf16 %v84_v18, %v83_v17  ;;  %p276_p2 = scmp.ne.s32.totalorder %s182_s12, %s275_s13  ;;  %p281_p4 = scmp.lt.s32.totalorder %s275_s13, %s275_s13 }
  0x2a   :  { %215 = vmatprep.subr.bf16.mxu0 %v214_v16 }
  0x2b   :  { %217 = vmatpush3.bf16.msra.mxu0 %v214_v16  ;;  %p282_p5 = por %p281_p4, %p280_p3 }
  0x2c   :  { %54 = vadd.xlane.f32.xlu0 %v53_v3  ;;  %219 = vmatprep.subr.bf16.mxu0 %v218_v19 }
  0x2d   :  { %p283_p6 = pnand %p282_p5, %p276_p2 }
  0x2f   :  { %221 = vmatpush3.bf16.msra.mxu0 %v218_v19 }
  0xb5   :  { %v52_v4 = vpop.xlane.xlu0 %51 }
  0xb6   :  { %v57_v5 = vmul.f32 0.03125, %v52_v4 }
  0xb8   :  { %v59_v6 = vsub.f32 %v47_v0, %v57_v5 }
  0xb9   :  { %v55_v7 = vpop.xlane.xlu0 %54 }
  0xba   :  { %v58_v8 = vmul.f32 0.03125, %v55_v7  ;;  %v61_v9 = vmul.f32 %v59_v6, %v59_v6 }
  0xbc   :  { %v60_v10 = vsub.f32 %v48_v1, %v58_v8  ;;  %v63_v11 = vsel %vm49_vm0, %v61_v9, 0.0 }
  0xbd   :  { %64 = vadd.xlane.f32.xlu1 %v63_v11 }
  0xbe   :  { %v62_v12 = vmul.f32 %v60_v10, %v60_v10 }
  0xc0   :  { %v66_v13 = vsel %vm49_vm0, %v62_v12, 0.0 }
  0xc1   :  { %67 = vadd.xlane.f32.xlu1 %v66_v13 }
 0x14a   :  { %v65_v20 = vpop.xlane.xlu1 %64 }
 0x14b   :  { %v69_v21 = vmul.f32 0.03125, %v65_v20 }
 0x14d   :  { %v71_v22 = vadd.f32 1e-05, %v69_v21 }
 0x14e   :  { %v68_v23 = vpop.xlane.xlu1 %67 }
 0x14f   :  { %227 = vrsqrt.f32 %v71_v22  ;;  %v70_v24 = vmul.f32 0.03125, %v68_v23 }
 0x151   :  { %v72_v25 = vadd.f32 1e-05, %v70_v24 }
 0x153   :  { %229 = vrsqrt.f32 %v72_v25 }
 0x159   :  { %v228_v26 = vpop.eup %227 }
 0x15a   :  { %v75_v27 = vmul.f32 %v228_v26, %v59_v6 }
 0x15c   :  { %77 = vst.msk [vmem:[#allocation2] sm:$0xff] %vm49_vm0, %v75_v27 }
 0x15d   :  { %v230_v28 = vpop.eup %229 }
 0x15e   :  { %v76_v29 = vmul.f32 %v230_v28, %v60_v10 }
 0x160   :  { %78 = vst.msk [vmem:[#allocation2 + $0x8] sm:$0xff] %vm49_vm0, %v76_v29 }
 0x163   :  { %v79_v30 = vld [vmem:[#allocation2] sm:$0xff] }
 0x164   :  { %211 = vmatprep.mubr.msk.f32.mxu0 %vm49_vm0, %v79_v30 }
 0x167   :  { %v80_v31 = vld [vmem:[#allocation2 + $0x8] sm:$0xff] }
 0x168   :  { %212 = vmatmul.mubr.msk.f32.vlgmr.msra.gmra.mrb[0].mxu0 %vm49_vm0, %v80_v31 }
 0x23b   :  { %v213_v33 = vpop.f32.mrb[0].mxu0 }
 0x23c   :  { %v171_v34 = vadd.f32 %v213_v33, %v194_v32  ;;  %v165_v35 = vpop.f32.mrb[1].mxu0 }
 0x23d   :  { %v166_v36 = vadd.f32 %v194_v32, %v165_v35 }
 0x23e   :  { %175 = vst.msk [vmem:[#allocation8 + $0x8] sm:$0xff] %vm49_vm0, %v171_v34 }
 0x23f   :  { %174 = vst.msk [vmem:[#allocation8] sm:$0xff] %vm49_vm0, %v166_v36 }
 0x240   :  { %286 = shalt.err (!%p283_p6)
}
 0x241   :  { %s287_s15 = scalar_lea.hbm %s389_s3, 256 }
 0x242   :  { %p288_p7 = scmp.ne.s32.totalorder %s389_s3, %s287_s15  ;;  %p291_p8 = scmp.lt.u32.totalorder %s287_s15, %s389_s3 }
 0x244   :  { %p293_p9 = pnand %p291_p8, %p288_p7 }
 0x246   :  { %296 = shalt.err (!%p293_p9)
}
 0x247   :  { %187 = dma.vmem_to_hbm [thread:$0]  %s182_s12, 256, %s389_s3, [#allocation5], %s304_s22, %s304_s22, %s305_s23  }
 0x248   :  { %301 = dma.done.wait [#allocation5], 256  }
 0x249   :  { %302 = vsyncadd [#allocation5], 4294967040 }
 0x24a   :  { %191 = vsyncpa [#allocation4], 1 }
 0x24b   :  { %192 = vsyncpa [#allocation7], 1 }
 0x24c   :  { %193 = vsyncpa [#allocation5], 1 }

</bundles_post_ra>
